<compile_context>
chip_gen: v7x
topology: tpu7x:2x2x1
jax: 0.10.0
libtpu: 0.0.40
codegen_flags: <defaults>
</compile_context>

<pallas_src>
import jax
import jax.numpy as jnp
from jax.experimental import pallas as pl
from jax.experimental.pallas import tpu as pltpu

# ---------------- small config consistent with the module --------------------
B, S = 2, 8          # batch, sequence
DIN = 32             # dim_in  (hidden = 32)
DOUT = 128           # dim_out (chosen so 2*DOUT = 256 and DOUT = 128 are lane-dense)

_INV_SQRT2 = 0.7071067811865476


# ---------------- exact GELU (erf via A&S 7.1.26, Pallas-safe ops) ------------
def _erf(z):
    p = 0.3275911
    a1, a2, a3, a4, a5 = (0.254829592, -0.284496736, 1.421413741,
                          -1.453152027, 1.061405429)
    s = jnp.where(z >= 0.0, 1.0, -1.0)
    az = jnp.abs(z)
    t = 1.0 / (1.0 + p * az)
    poly = ((((a5 * t + a4) * t + a3) * t + a2) * t + a1) * t
    return s * (1.0 - poly * jnp.exp(-az * az))


def _gelu_exact(g):
    # PyTorch F.gelu default (approximate='none'): 0.5 * g * (1 + erf(g / sqrt(2)))
    return 0.5 * g * (1.0 + _erf(g * _INV_SQRT2))


# ---------------- Pallas kernel ----------------------------------------------
def geglu_kernel(x_ref, w_ref, b_ref, o_ref):
    # x_ref: (TR, DIN)   w_ref: (DIN, 2*DOUT)   b_ref: (1, 2*DOUT)   o_ref: (TR, DOUT)
    y = jnp.dot(x_ref[...], w_ref[...],
                preferred_element_type=jnp.float32) + b_ref[...]
    d = o_ref.shape[-1]
    val = y[:, :d]           # chunk(2, dim=-1)[0]
    gate = y[:, d:]          # chunk(2, dim=-1)[1]
    o_ref[...] = (val * _gelu_exact(gate)).astype(o_ref.dtype)


# ---------------- wrapper -----------------------------------------------------
def _row_tile(rows):
    for t in (512, 256, 128):
        if rows > t and rows % t == 0:
            return t
    return rows


def geglu_forward(x, w, b):
    """x: (..., DIN); w: (DIN, 2*DOUT) (== PyTorch proj.weight.T); b: (2*DOUT,)."""
    orig_shape = x.shape
    din = orig_shape[-1]
    dout2 = w.shape[1]
    dout = dout2 // 2

    xf = x.reshape(-1, din).astype(jnp.float32)      # fold batch+seq into rows
    rows = xf.shape[0]
    tr = _row_tile(rows)
    b2 = b.reshape(1, dout2).astype(jnp.float32)

    out = pl.pallas_call(
        geglu_kernel,
        out_shape=jax.ShapeDtypeStruct((rows, dout), jnp.float32),
        grid=(rows // tr,),
        in_specs=[
            pl.BlockSpec((tr, din), lambda i: (i, 0)),        # activations
            pl.BlockSpec((din, dout2), lambda i: (0, 0)),     # proj weight
            pl.BlockSpec((1, dout2), lambda i: (0, 0)),       # proj bias
        ],
        out_specs=pl.BlockSpec((tr, dout), lambda i: (i, 0)),
        compiler_params=pltpu.CompilerParams(
            dimension_semantics=("parallel",)),
    )(xf, w.astype(jnp.float32), b2)

    return out.reshape(*orig_shape[:-1], dout)


# ---------------- pure-JAX reference (exact erf GELU) -------------------------
def geglu_reference(x, w, b):
    y = x.astype(jnp.float32) @ w.astype(jnp.float32) + b.astype(jnp.float32)
    d = y.shape[-1] // 2
    val, gate = y[..., :d], y[..., d:]
    gelu = 0.5 * gate * (1.0 + jax.scipy.special.erf(gate * _INV_SQRT2))
    return val * gelu


if __name__ == "__main__":
    key = jax.random.PRNGKey(0)
    kx, kw, kb = jax.random.split(key, 3)

    x = jax.random.normal(kx, (B, S, DIN), jnp.float32)
    # PyTorch stores proj.weight as (2*DOUT, DIN); we keep its transpose (DIN, 2*DOUT).
    w = jax.random.normal(kw, (DIN, 2 * DOUT), jnp.float32) / jnp.sqrt(DIN)
    b = 0.1 * jax.random.normal(kb, (2 * DOUT,), jnp.float32)

    out = jax.block_until_ready(geglu_forward(x, w, b))
    ref = jax.block_until_ready(geglu_reference(x, w, b))

    assert out.shape == (B, S, DOUT)
    assert jnp.allclose(out, ref, atol=1e-3, rtol=1e-3), (
        f"max abs err = {jnp.max(jnp.abs(out - ref))}")

    print("KERNEL_OK")
</pallas_src>

<mosaic_0001>
module attributes {stable_mosaic.version = 11 : i64} {
  func.func @geglu_kernel(%arg0: i32, %arg1: memref<16x32xf32, #tpu.memory_space<vmem>>, %arg2: memref<32x256xf32, #tpu.memory_space<vmem>>, %arg3: memref<1x256xf32, #tpu.memory_space<vmem>>, %arg4: memref<16x128xf32, #tpu.memory_space<vmem>>) attributes {dimension_semantics = [#tpu.dimension_semantics<parallel>], iteration_bounds = array<i64: 1>, scalar_prefetch = 0 : i64, scratch_operands = 0 : i64, tpu.core_type = #tpu.core_type<tc>, window_params = [{transform_indices = @transform_0, window_bounds = array<i64: 16, 32>}, {pipeline_mode = #tpu.pipeline_mode<synchronous>, transform_indices = @transform_1, window_bounds = array<i64: 32, 256>}, {pipeline_mode = #tpu.pipeline_mode<synchronous>, transform_indices = @transform_2, window_bounds = array<i64: 1, 256>}, {transform_indices = @transform_3, window_bounds = array<i64: 16, 128>}]} {
    %c0 = arith.constant 0 : index
    %c0_0 = arith.constant 0 : index
    %0 = vector.load %arg1[%c0, %c0_0] : memref<16x32xf32, #tpu.memory_space<vmem>>, vector<16x32xf32>
    %c0_1 = arith.constant 0 : index
    %c0_2 = arith.constant 0 : index
    %1 = vector.load %arg2[%c0_1, %c0_2] : memref<32x256xf32, #tpu.memory_space<vmem>>, vector<32x256xf32>
    %cst = arith.constant dense<0.000000e+00> : vector<16x256xf32>
    %2 = tpu.matmul %0, %1, %cst {dimension_numbers = #tpu.dot_dimension_numbers<[1], [0], [0], [1], [0, 0, 1, 1], [], []>} : vector<16x32xf32>, vector<32x256xf32>, vector<16x256xf32> -> vector<16x256xf32>
    %c0_3 = arith.constant 0 : index
    %c0_4 = arith.constant 0 : index
    %3 = vector.load %arg3[%c0_3, %c0_4] : memref<1x256xf32, #tpu.memory_space<vmem>>, vector<1x256xf32>
    %4 = vector.broadcast %3 : vector<1x256xf32> to vector<16x256xf32>
    %5 = arith.addf %2, %4 : vector<16x256xf32>
    %6 = vector.extract_strided_slice %5 {offsets = [0, 0], sizes = [16, 128], strides = [1, 1]} : vector<16x256xf32> to vector<16x128xf32>
    %7 = vector.extract_strided_slice %5 {offsets = [0, 128], sizes = [16, 128], strides = [1, 1]} : vector<16x256xf32> to vector<16x128xf32>
    %cst_5 = arith.constant 5.000000e-01 : f32
    %8 = vector.broadcast %cst_5 : f32 to vector<16x128xf32>
    %9 = arith.mulf %8, %7 : vector<16x128xf32>
    %cst_6 = arith.constant 0.707106769 : f32
    %10 = vector.broadcast %cst_6 : f32 to vector<16x128xf32>
    %11 = arith.mulf %7, %10 : vector<16x128xf32>
    %cst_7 = arith.constant 0.000000e+00 : f32
    %12 = vector.broadcast %cst_7 : f32 to vector<16x128xf32>
    %13 = arith.cmpf oge, %11, %12 : vector<16x128xf32>
    %cst_8 = arith.constant 1.000000e+00 : f32
    %cst_9 = arith.constant -1.000000e+00 : f32
    %14 = vector.broadcast %cst_8 : f32 to vector<16x128xf32>
    %15 = vector.broadcast %cst_9 : f32 to vector<16x128xf32>
    %16 = arith.select %13, %14, %15 : vector<16x128xi1>, vector<16x128xf32>
    %17 = math.absf %11 : vector<16x128xf32>
    %cst_10 = arith.constant 0.327591091 : f32
    %18 = vector.broadcast %cst_10 : f32 to vector<16x128xf32>
    %19 = arith.mulf %18, %17 : vector<16x128xf32>
    %cst_11 = arith.constant 1.000000e+00 : f32
    %20 = vector.broadcast %cst_11 : f32 to vector<16x128xf32>
    %21 = arith.addf %20, %19 : vector<16x128xf32>
    %cst_12 = arith.constant 1.000000e+00 : f32
    %22 = vector.broadcast %cst_12 : f32 to vector<16x128xf32>
    %23 = arith.divf %22, %21 : vector<16x128xf32>
    %cst_13 = arith.constant 1.06140542 : f32
    %24 = vector.broadcast %cst_13 : f32 to vector<16x128xf32>
    %25 = arith.mulf %24, %23 : vector<16x128xf32>
    %cst_14 = arith.constant -1.45315206 : f32
    %26 = vector.broadcast %cst_14 : f32 to vector<16x128xf32>
    %27 = arith.addf %25, %26 : vector<16x128xf32>
    %28 = arith.mulf %27, %23 : vector<16x128xf32>
    %cst_15 = arith.constant 1.42141378 : f32
    %29 = vector.broadcast %cst_15 : f32 to vector<16x128xf32>
    %30 = arith.addf %28, %29 : vector<16x128xf32>
    %31 = arith.mulf %30, %23 : vector<16x128xf32>
    %cst_16 = arith.constant -0.284496725 : f32
    %32 = vector.broadcast %cst_16 : f32 to vector<16x128xf32>
    %33 = arith.addf %31, %32 : vector<16x128xf32>
    %34 = arith.mulf %33, %23 : vector<16x128xf32>
    %cst_17 = arith.constant 0.254829586 : f32
    %35 = vector.broadcast %cst_17 : f32 to vector<16x128xf32>
    %36 = arith.addf %34, %35 : vector<16x128xf32>
    %37 = arith.mulf %36, %23 : vector<16x128xf32>
    %cst_18 = arith.constant 0.000000e+00 : f32
    %38 = vector.broadcast %cst_18 : f32 to vector<16x128xf32>
    %39 = arith.subf %38, %17 : vector<16x128xf32>
    %40 = arith.mulf %39, %17 : vector<16x128xf32>
    %41 = math.exp %40 : vector<16x128xf32>
    %42 = arith.mulf %37, %41 : vector<16x128xf32>
    %cst_19 = arith.constant 1.000000e+00 : f32
    %43 = vector.broadcast %cst_19 : f32 to vector<16x128xf32>
    %44 = arith.subf %43, %42 : vector<16x128xf32>
    %45 = arith.mulf %16, %44 : vector<16x128xf32>
    %cst_20 = arith.constant 1.000000e+00 : f32
    %46 = vector.broadcast %cst_20 : f32 to vector<16x128xf32>
    %47 = arith.addf %46, %45 : vector<16x128xf32>
    %48 = arith.mulf %9, %47 : vector<16x128xf32>
    %49 = arith.mulf %6, %48 : vector<16x128xf32>
    %c0_21 = arith.constant 0 : index
    %c0_22 = arith.constant 0 : index
    %50 = vector.load %arg4[%c0_21, %c0_22] : memref<16x128xf32, #tpu.memory_space<vmem>>, vector<16x128xf32>
    tpu.vector_store %arg4[%c0_21, %c0_22], %49 {strides = array<i32>} : memref<16x128xf32, #tpu.memory_space<vmem>>, vector<16x128xf32>,
    return
  }
  func.func @transform_0(%arg0: i32) -> (i32, i32) {
    %c0_i32 = arith.constant 0 : i32
    %c0_i32_0 = arith.constant 0 : i32
    return %arg0, %c0_i32 : i32, i32
  }
  func.func @transform_1(%arg0: i32) -> (i32, i32) {
    %c0_i32 = arith.constant 0 : i32
    %c0_i32_0 = arith.constant 0 : i32
    %c0_i32_1 = arith.constant 0 : i32
    return %c0_i32, %c0_i32_0 : i32, i32
  }
  func.func @transform_2(%arg0: i32) -> (i32, i32) {
    %c0_i32 = arith.constant 0 : i32
    %c0_i32_0 = arith.constant 0 : i32
    %c0_i32_1 = arith.constant 0 : i32
    return %c0_i32, %c0_i32_0 : i32, i32
  }
  func.func @transform_3(%arg0: i32) -> (i32, i32) {
    %c0_i32 = arith.constant 0 : i32
    %c0_i32_0 = arith.constant 0 : i32
    return %arg0, %c0_i32 : i32, i32
  }
}

</mosaic_0001>

<bundles_post_ra>
// kernel: tpu_custom_call.1
= control target key start
LH: loop header
LB: loop body
LE: loop exit
PB: predicated region body
PF: predicated region fallthrough
CT: control target
= control target key end

     0   :  { %8 = vsyncpa [#allocation3], 0  ;;  %s408_s0 = inlined_call_operand.hbm [shape: f32[16,32], index: 0, kind: input, shape index: {}]   ;;  %s409_s1 = inlined_call_operand.hbm [shape: f32[32,256], index: 1, kind: input, shape index: {}]   ;;  %s410_s2 = inlined_call_operand.vmem [shape: f32[1,256], index: 2, kind: input, shape index: {}]   ;;  %s411_s3 = inlined_call_operand.hbm [shape: f32[16,128], index: 3, kind: output, shape index: {}]  }
   0x1   :  { %9 = vsyncpa [#allocation6], 0 }
   0x2   :  { %10 = vsyncpa [#allocation4], 0  ;;  %s328_s12 = smov [#allocation2]   ;;  %s256_s16 = scalar_lea.hbm %s408_s0, 256 }
   0x3   :  { %s16_s13 = sshll.u32 %s328_s12, 4  ;;  %p257_p0 = scmp.ne.s32.totalorder %s408_s0, %s256_s16  ;;  %s17_s13 = int_to_ptr.vmem [resolvable:$true] %s16_s13 }
   0x4   :  { %p260_p1 = scmp.lt.u32.totalorder %s256_s16, %s408_s0 }
   0x6   :  { %p262_p2 = pnand %p260_p1, %p257_p0 }
   0x8   :  { %265 = shalt.err (!%p262_p2)
}
   0x9   :  { %s266_s21 = scalar_lea.vmem %s17_s13, 256  ;;  %p271_p4 = scmp.lt.s32.totalorder %s17_s13, %s17_s13 }
   0xa   :  { %p267_p3 = scmp.ne.s32.totalorder %s17_s13, %s266_s21  ;;  %p272_p5 = scmp.lt.s32.totalorder %s266_s21, %s266_s21 }
   0xc   :  { %p273_p6 = por %p272_p5, %p271_p4 }
   0xe   :  { %p274_p7 = pnand %p273_p6, %p267_p3 }
  0x10   :  { %277 = shalt.err (!%p274_p7)
}
  0x11   :  { %s329_s22 = smov 128   ;;  %s330_s23 = smov 8  }
  0x12   :  { %22 = dma.hbm_to_vmem [thread:$0]  %s408_s0, 256, %s17_s13, [#allocation3], %s329_s22, %s329_s22, %s330_s23  }
  0x13   :  { %s331_s26 = smov [#allocation5]   ;;  %s278_s30 = scalar_lea.hbm %s409_s1, 1024 }
  0x14   :  { %s28_s27 = sshll.u32 %s331_s26, 4  ;;  %p279_p8 = scmp.ne.s32.totalorder %s409_s1, %s278_s30  ;;  %s29_s27 = int_to_ptr.vmem [resolvable:$true] %s28_s27 }
  0x15   :  { %p282_p9 = scmp.lt.u32.totalorder %s278_s30, %s409_s1 }
  0x17   :  { %p284_p10 = pnand %p282_p9, %p279_p8 }
  0x19   :  { %287 = shalt.err (!%p284_p10)
}
  0x1a   :  { %s288_s8 = scalar_lea.vmem %s29_s27, 1024  ;;  %p293_p12 = scmp.lt.s32.totalorder %s29_s27, %s29_s27 }
  0x1b   :  { %p289_p11 = scmp.ne.s32.totalorder %s29_s27, %s288_s8  ;;  %p294_p13 = scmp.lt.s32.totalorder %s288_s8, %s288_s8 }
  0x1d   :  { %p295_p0 = por %p294_p13, %p293_p12 }
  0x1f   :  { %p296_p1 = pnand %p295_p0, %p289_p11 }
  0x21   :  { %299 = shalt.err (!%p296_p1)
}
  0x22   :  { %s332_s0 = smov 256   ;;  %s333_s9 = smov 16  }
  0x23   :  { %34 = dma.hbm_to_vmem [thread:$0]  %s409_s1, 1024, %s29_s27, [#allocation6], %s332_s0, %s332_s0, %s333_s9  }
  0x24   :  { %322 = dma.done.wait [#allocation3], 256  }
  0x25   :  { %323 = vsyncadd [#allocation3], 4294967040 }
  0x26   :  { %324 = dma.done.wait [#allocation6], 1024  }
  0x27   :  { %325 = vsyncadd [#allocation6], 4294966272  ;;  %v334_v0 = vmov 0.0   ;;  %v46_v1 = vld [vmem:[#allocation5 + $0x8] sm:$0xff]  ;;  %v48_v2 = vld [vmem:[#allocation5 + $0x18] sm:$0xff]  ;;  %vm65_vm0 = vcmask 261120   ;;  %v55_v15 = vlaneseq }
  0x28   :  { %136 = vmatprep.mubr.f32.mxu0 %v334_v0  ;;  %142 = vmatprep.mubr.f32.mxu1 %v334_v0  ;;  %v45_v3 = vld [vmem:[#allocation5] sm:$0xff]  ;;  %v227_v4 = vpack.c.bf16 %v48_v2, %v46_v1  ;;  %v47_v5 = vld [vmem:[#allocation5 + $0x10] sm:$0xff]  ;;  %v50_v6 = vld [vmem:[#allocation5 + $0x28] sm:$0xff]  ;;  %v335_v2 = vmov -1.0  }
  0x29   :  { %v52_v7 = vld [vmem:[#allocation5 + $0x38] sm:$0xff]  ;;  %v229_v8 = vpack.c.bf16 %v47_v5, %v45_v3  ;;  %v49_v10 = vld [vmem:[#allocation5 + $0x20] sm:$0xff]  ;;  %v51_v11 = vld [vmem:[#allocation5 + $0x30] sm:$0xff]  ;;  %v56_v16 = vshrl.u32 %v55_v15, 7 }
  0x2a   :  { %v231_v9 = vpack.c.bf16 %v52_v7, %v50_v6  ;;  %228 = vmatprep.subr.bf16.mxu0 %v227_v4  ;;  %235 = vmatprep.subr.bf16.mxu1 %v227_v4  ;;  %v233_v12 = vpack.c.bf16 %v51_v11, %v49_v10  ;;  %v43_v13 = vld [vmem:[#allocation2] sm:$0xff]  ;;  %v44_v14 = vld [vmem:[#allocation2 + $0x8] sm:$0xff] }
  0x2b   :  { %230 = vmatpush1.bf16.msra.mxu0 %v229_v8  ;;  %237 = vmatpush1.bf16.msra.mxu1 %v229_v8  ;;  %v61_v17 = vsub.s32 1, %v56_v16  ;;  %v53_v18 = vld [vmem:[%s410_s2] sm:$0x3]  ;;  %v57_v62 = vsub.s32 0, %v56_v16  ;;  %s336_s2 = smov [#allocation7]  }
  0x2c   :  { %232 = vmatprep.subr.bf16.mxu0 %v231_v9  ;;  %236 = vmatprep.subr.bf16.mxu1 %v231_v9  ;;  %s212_s13 = sshll.u32 %s336_s2, 4  ;;  %s213_s13 = int_to_ptr.vmem [resolvable:$true] %s212_s13 }
  0x2d   :  { %v62_v19 = vrot.slane %v53_v18, %v61_v17  ;;  %v58_v5 = vrot.slane %v53_v18, %v57_v62  ;;  %s300_s14 = scalar_lea.vmem %s213_s13, 256  ;;  %p305_p3 = scmp.lt.s32.totalorder %s213_s13, %s213_s13 }
  0x2e   :  { %p301_p2 = scmp.ne.s32.totalorder %s213_s13, %s300_s14  ;;  %p306_p4 = scmp.lt.s32.totalorder %s300_s14, %s300_s14 }
  0x2f   :  { %234 = vmatpush1.bf16.msra.mxu0 %v233_v12  ;;  %238 = vmatpush1.bf16.msra.mxu1 %v233_v12 }
  0x30   :  { %p307_p5 = por %p306_p4, %p305_p3 }
  0x32   :  { %225 = vmatmul.mubr.msk.f32.vlgmr.msra.gmra.mrb[0].mxu0 %vm65_vm0, %v43_v13  ;;  %226 = vmatmul.mubr.msk.f32.vlgmr.msra.gmra.mrb[0].mxu1 %vm65_vm0, %v44_v14  ;;  %p308_p6 = pnand %p307_p5, %p301_p2 }
 0x105   :  { %v387_v20 = vpop.f32.mrb[0].mxu0  ;;  %v389_v21 = vpop.f32.mrb[0].mxu1 }
 0x106   :  { %v140_v22 = vpop.f32.mrb[1].mxu0  ;;  %v146_v23 = vpop.f32.mrb[1].mxu1  ;;  %v139_v13 = vadd.f32 %v387_v20, %v58_v5  ;;  %v145_v15 = vadd.f32 %v389_v21, %v58_v5 }
 0x107   :  { %v141_v24 = vadd.f32 %v140_v22, %v62_v19  ;;  %v147_v25 = vadd.f32 %v146_v23, %v62_v19 }
 0x109   :  { %v151_v26 = vmul.f32 0.70710677, %v141_v24  ;;  %v152_v27 = vmul.f32 0.70710677, %v147_v25  ;;  %v149_v9 = vmul.f32 0.5, %v141_v24  ;;  %v150_v11 = vmul.f32 0.5, %v147_v25 }
 0x10b   :  { %v157_v28 = vand.u32 2147483647, %v151_v26  ;;  %v158_v29 = vand.u32 2147483647, %v152_v27  ;;  %vm153_vm1 = vcmp.ge.f32.partialorder %v151_v26, 0.0  ;;  %vm154_vm2 = vcmp.ge.f32.partialorder %v152_v27, 0.0 }
 0x10c   :  { %v155_v3 = vsel %vm153_vm1, 1.0, %v335_v2  ;;  %v156_v7 = vsel %vm154_vm2, 1.0, %v335_v2 }
 0x10d   :  { %v159_v30 = vmul.f32 0.3275911, %v157_v28  ;;  %v160_v31 = vmul.f32 0.3275911, %v158_v29  ;;  %v185_v34 = vsub.f32 0.0, %v157_v28  ;;  %v186_v35 = vsub.f32 0.0, %v158_v29 }
 0x10f   :  { %v161_v32 = vadd.f32 1.0, %v159_v30  ;;  %v162_v33 = vadd.f32 1.0, %v160_v31  ;;  %v187_v37 = vmul.f32 %v185_v34, %v157_v28  ;;  %v188_v40 = vmul.f32 %v186_v35, %v158_v29 }
 0x111   :  { %248 = vrcp.f32 %v161_v32  ;;  %v189_v43 = vmul.f32 1.442695, %v187_v37  ;;  %v191_v46 = vmul.f32 1.442695, %v188_v40 }
 0x112   :  { %250 = vrcp.f32 %v162_v33 }
 0x113   :  { %252 = vpow2.f32 %v189_v43 }
 0x114   :  { %254 = vpow2.f32 %v191_v46 }
 0x11b   :  { %v249_v36 = vpop.eup %248 }
 0x11c   :  { %v251_v38 = vpop.eup %250  ;;  %v167_v39 = vmul.f32 1.0614054, %v249_v36 }
 0x11d   :  { %v168_v41 = vmul.f32 1.0614054, %v251_v38  ;;  %v253_v59 = vpop.eup %252 }
 0x11e   :  { %v169_v42 = vadd.f32 -1.4531521, %v167_v39  ;;  %v255_v61 = vpop.eup %254 }
 0x11f   :  { %v170_v44 = vadd.f32 -1.4531521, %v168_v41 }
 0x120   :  { %v171_v45 = vmul.f32 %v249_v36, %v169_v42 }
 0x121   :  { %v172_v47 = vmul.f32 %v251_v38, %v170_v44 }
 0x122   :  { %v173_v48 = vadd.f32 1.4214138, %v171_v45 }
 0x123   :  { %v174_v49 = vadd.f32 1.4214138, %v172_v47 }
 0x124   :  { %v175_v50 = vmul.f32 %v249_v36, %v173_v48 }
 0x125   :  { %v176_v51 = vmul.f32 %v251_v38, %v174_v49 }
 0x126   :  { %v177_v52 = vadd.f32 -0.28449672, %v175_v50 }
 0x127   :  { %v178_v53 = vadd.f32 -0.28449672, %v176_v51 }
 0x128   :  { %v179_v54 = vmul.f32 %v249_v36, %v177_v52 }
 0x129   :  { %v180_v55 = vmul.f32 %v251_v38, %v178_v53 }
 0x12a   :  { %v181_v56 = vadd.f32 0.2548296, %v179_v54 }
 0x12b   :  { %v182_v57 = vadd.f32 0.2548296, %v180_v55 }
 0x12c   :  { %v183_v58 = vmul.f32 %v249_v36, %v181_v56 }
 0x12d   :  { %v184_v60 = vmul.f32 %v251_v38, %v182_v57 }
 0x12e   :  { %v193_v63 = vmul.f32 %v253_v59, %v183_v58 }
 0x12f   :  { %v194_v0 = vmul.f32 %v255_v61, %v184_v60 }
 0x130   :  { %v195_v1 = vsub.f32 1.0, %v193_v63 }
 0x131   :  { %v196_v4 = vsub.f32 1.0, %v194_v0 }
 0x132   :  { %v197_v6 = vmul.f32 %v195_v1, %v155_v3 }
 0x133   :  { %v198_v8 = vmul.f32 %v196_v4, %v156_v7 }
 0x134   :  { %v199_v10 = vadd.f32 1.0, %v197_v6 }
 0x135   :  { %v200_v12 = vadd.f32 1.0, %v198_v8 }
 0x136   :  { %v201_v14 = vmul.f32 %v199_v10, %v149_v9 }
 0x137   :  { %v202_v16 = vmul.f32 %v200_v12, %v150_v11 }
 0x138   :  { %v203_v17 = vmul.f32 %v201_v14, %v139_v13 }
 0x139   :  { %v204_v19 = vmul.f32 %v202_v16, %v145_v15 }
 0x13a   :  { %205 = vst [vmem:[#allocation7] sm:$0xff] %v203_v17 }
 0x13b   :  { %206 = vst [vmem:[#allocation7 + $0x8] sm:$0xff] %v204_v19 }
 0x13c   :  { %311 = shalt.err (!%p308_p6)
}
 0x13d   :  { %s312_s17 = scalar_lea.hbm %s411_s3, 256 }
 0x13e   :  { %p313_p7 = scmp.ne.s32.totalorder %s411_s3, %s312_s17  ;;  %p316_p8 = scmp.lt.u32.totalorder %s312_s17, %s411_s3 }
 0x140   :  { %p318_p9 = pnand %p316_p8, %p313_p7 }
 0x142   :  { %321 = shalt.err (!%p318_p9)
}
 0x143   :  { %218 = dma.vmem_to_hbm [thread:$0]  %s213_s13, 256, %s411_s3, [#allocation4], %s329_s22, %s329_s22, %s330_s23  }
 0x144   :  { %326 = dma.done.wait [#allocation4], 256  }
 0x145   :  { %327 = vsyncadd [#allocation4], 4294967040 }
 0x146   :  { %222 = vsyncpa [#allocation3], 1 }
 0x147   :  { %223 = vsyncpa [#allocation6], 1 }
 0x148   :  { %224 = vsyncpa [#allocation4], 1 }

</bundles_post_ra>
